<compile_context>
chip_gen: v5e
topology: v5e:2x2
jax: 0.10.0
libtpu: 0.0.40
codegen_flags: <defaults>
</compile_context>

<pallas_src>
import functools

import numpy as np
import jax
import jax.numpy as jnp
from jax.experimental import pallas as pl
from jax.experimental.pallas import tpu as pltpu


def _round_up(x, m):
    return (x + m - 1) // m * m


# ----------------------------------------------------------------------------
# Fused temporal-block Pallas kernel
# ----------------------------------------------------------------------------
def _fused_temporal_block_kernel(*refs, K, dilation, L, B, has_down):
    """One full TCN residual block for the whole (B, L) tile.

    refs (has_down=True):
      x, w1f, b1, w2f, b2, wdf, bd, out, xpad_scr, h1pad_scr
    refs (has_down=False):
      x, w1f, b1, w2f, b2, out, xpad_scr, h1pad_scr

    x:    (B, L, Cin)            channels-last, Cin padded to 128
    w1f:  (K*Cin, Cout)          flattened conv1 weights (tap-major)
    w2f:  (K*Cout, Cout)         flattened conv2 weights
    b*:   (1, Cout)
    wdf:  (Cin, Cout)            1x1 downsample weights (residual path)
    out:  (B, L, Cout)
    xpad_scr:  (B, pad_a + L, Cin)   VMEM staging (causal zero pad)
    h1pad_scr: (B, pad_a + L, Cout)  VMEM staging for conv2 input
    """
    if has_down:
        (x_ref, w1_ref, b1_ref, w2_ref, b2_ref, wd_ref, bd_ref,
         o_ref, xpad_ref, h1pad_ref) = refs
    else:
        (x_ref, w1_ref, b1_ref, w2_ref, b2_ref,
         o_ref, xpad_ref, h1pad_ref) = refs
        wd_ref = bd_ref = None

    pad = (K - 1) * dilation
    pad_a = _round_up(pad, 8)          # 8-aligned staging offset for clean stores
    off = pad_a - pad
    Cin = x_ref.shape[-1]
    Cout = o_ref.shape[-1]

    x = x_ref[...]                     # (B, L, Cin)

    # ---- stage causally left-padded input in VMEM (no HBM pad copies) ----
    xpad_ref[:, 0:pad_a, :] = jnp.zeros((B, pad_a, Cin), jnp.float32)
    xpad_ref[:, pad_a:pad_a + L, :] = x

    # ---- conv1: im2col -> single (B*L, K*Cin) x (K*Cin, Cout) MXU matmul ----
    taps1 = [xpad_ref[:, off + k * dilation: off + k * dilation + L, :]
             for k in range(K)]
    im1 = jnp.concatenate(taps1, axis=-1).reshape(B * L, K * Cin)
    h1 = jnp.dot(im1, w1_ref[...], preferred_element_type=jnp.float32)
    h1 = jnp.maximum(h1 + b1_ref[...], 0.0)          # bias + ReLU (dropout = id)

    # ---- conv2 on the hidden activation, staged the same way ----
    h1pad_ref[:, 0:pad_a, :] = jnp.zeros((B, pad_a, Cout), jnp.float32)
    h1pad_ref[:, pad_a:pad_a + L, :] = h1.reshape(B, L, Cout)

    taps2 = [h1pad_ref[:, off + k * dilation: off + k * dilation + L, :]
             for k in range(K)]
    im2 = jnp.concatenate(taps2, axis=-1).reshape(B * L, K * Cout)
    h2 = jnp.dot(im2, w2_ref[...], preferred_element_type=jnp.float32)
    h2 = jnp.maximum(h2 + b2_ref[...], 0.0)

    # ---- residual path + final add+ReLU fused in the epilogue ----
    if has_down:
        res = jnp.dot(x.reshape(B * L, Cin), wd_ref[...],
                      preferred_element_type=jnp.float32) + bd_ref[...]
    else:
        res = x.reshape(B * L, Cout)

    o_ref[...] = jnp.maximum(h2 + res, 0.0).reshape(B, L, Cout)


def temporal_block_fused(x, blk, dilation, K):
    """x: (B, L, Cin_padded) -> (B, L, Cout_padded); one fused pallas_call."""
    B, L, Cinp = x.shape
    Coutp = blk["w1f"].shape[-1]
    has_down = "wdf" in blk
    pad = (K - 1) * dilation
    pad_a = _round_up(pad, 8)

    kernel = functools.partial(
        _fused_temporal_block_kernel,
        K=K, dilation=dilation, L=L, B=B, has_down=has_down)

    in_arrays = [x, blk["w1f"], blk["b1"], blk["w2f"], blk["b2"]]
    in_specs = [
        pl.BlockSpec((B, L, Cinp), lambda i: (0, 0, 0)),
        pl.BlockSpec((K * Cinp, Coutp), lambda i: (0, 0)),
        pl.BlockSpec((1, Coutp), lambda i: (0, 0)),
        pl.BlockSpec((K * Coutp, Coutp), lambda i: (0, 0)),
        pl.BlockSpec((1, Coutp), lambda i: (0, 0)),
    ]
    if has_down:
        in_arrays += [blk["wdf"], blk["bd"]]
        in_specs += [
            pl.BlockSpec((Cinp, Coutp), lambda i: (0, 0)),
            pl.BlockSpec((1, Coutp), lambda i: (0, 0)),
        ]

    return pl.pallas_call(
        kernel,
        out_shape=jax.ShapeDtypeStruct((B, L, Coutp), jnp.float32),
        grid=(1,),   # toy sizes: whole (B, L) tile fits in VMEM -> one grid point
        in_specs=in_specs,
        out_specs=pl.BlockSpec((B, L, Coutp), lambda i: (0, 0, 0)),
        scratch_shapes=[
            pltpu.VMEM((B, pad_a + L, Cinp), jnp.float32),
            pltpu.VMEM((B, pad_a + L, Coutp), jnp.float32),
        ],
        compiler_params=pltpu.CompilerParams(
            dimension_semantics=("arbitrary",),
            vmem_limit_bytes=32 * 1024 * 1024,
        ),
    )(*in_arrays)


# ----------------------------------------------------------------------------
# Model params (logical) + padded/flattened kernel params
# ----------------------------------------------------------------------------
def position_encoding_init(n_position, d_pos_vec):
    """Identical to the PyTorch helper."""
    position_enc = np.array(
        [
            [pos / np.power(10000, 2 * (j // 2) / d_pos_vec) for j in range(d_pos_vec)]
            if pos != 0
            else np.zeros(d_pos_vec)
            for pos in range(n_position)
        ]
    )
    position_enc[1:, 0::2] = np.sin(position_enc[1:, 0::2])
    position_enc[1:, 1::2] = np.cos(position_enc[1:, 1::2])
    return jnp.asarray(position_enc, dtype=jnp.float32)


def init_params(key, embedding_dim, max_length, channel, level, kernel_size,
                character_size=252):
    keys = jax.random.split(key, 2 + 4 * level)
    emb = jax.random.normal(keys[0], (character_size, embedding_dim), jnp.float32)
    emb = emb.at[0].set(0.0)  # padding_idx=0
    pe = position_encoding_init(max_length, embedding_dim)  # frozen, row 0 zeros

    channels = [channel] * level
    blocks = []
    ki = 2
    for i in range(level):
        cin = embedding_dim if i == 0 else channels[i - 1]
        cout = channels[i]
        blk = {
            # standard TCN init_weights: normal(0, 0.01)
            "w1": 0.01 * jax.random.normal(keys[ki], (kernel_size, cin, cout), jnp.float32),
            "b1": jnp.zeros((cout,), jnp.float32),
            "w2": 0.01 * jax.random.normal(keys[ki + 1], (kernel_size, cout, cout), jnp.float32),
            "b2": jnp.zeros((cout,), jnp.float32),
        }
        if cin != cout:  # downsample 1x1 conv on the residual path
            blk["wd"] = 0.01 * jax.random.normal(keys[ki + 2], (1, cin, cout), jnp.float32)
            blk["bd"] = jnp.zeros((cout,), jnp.float32)
        blocks.append(blk)
        ki += 4
    return {"emb": emb, "pe": pe, "blocks": blocks}


def prepare_kernel_params(params):
    """Zero-pad channels to multiples of 128 (lane-dense) and flatten conv
    weights to the (K*Cin, Cout) im2col layout. One-time parameter prep."""
    emb = params["emb"]
    pe = params["pe"]
    E = emb.shape[1]
    Ep = _round_up(E, 128)
    kp = {
        "emb": jnp.pad(emb, ((0, 0), (0, Ep - E))),   # gather output is lane-dense
        "pe": jnp.pad(pe, ((0, 0), (0, Ep - E))),
        "blocks": [],
    }
    for blk in params["blocks"]:
        K, cin, cout = blk["w1"].shape
        cinp, coutp = _round_up(cin, 128), _round_up(cout, 128)
        w1p = jnp.pad(blk["w1"], ((0, 0), (0, cinp - cin), (0, coutp - cout)))
        w2p = jnp.pad(blk["w2"], ((0, 0), (0, coutp - cout), (0, coutp - cout)))
        nb = {
            "w1f": w1p.reshape(K * cinp, coutp),
            "b1": jnp.pad(blk["b1"], (0, coutp - cout)).reshape(1, coutp),
            "w2f": w2p.reshape(K * coutp, coutp),
            "b2": jnp.pad(blk["b2"], (0, coutp - cout)).reshape(1, coutp),
        }
        if "wd" in blk:
            wd = blk["wd"][0]  # (cin, cout)
            nb["wdf"] = jnp.pad(wd, ((0, cinp - cin), (0, coutp - cout)))
            nb["bd"] = jnp.pad(blk["bd"], (0, coutp - cout)).reshape(1, coutp)
        kp["blocks"].append(nb)
    return kp


def tcn_forward(inputs, lens, kparams, channel, kernel_size):
    """inputs, lens: (B, L) int32. Returns (B, L, channel) float32
    (matches the PyTorch module output after its trailing .transpose(1, 2))."""
    # embedding + positional-encoding gathers in JAX glue (tables pre-padded,
    # so activations are already lane-dense 128-wide).
    x = kparams["emb"][inputs] + kparams["pe"][lens]   # (B, L, Ep)
    for i, blk in enumerate(kparams["blocks"]):
        x = temporal_block_fused(x, blk, 2 ** i, kernel_size)
    return x[..., :channel]                            # slice off zero pad lanes


# ----------------------------------------------------------------------------
# Pure-JAX reference (lax.conv) for a correctness check
# ----------------------------------------------------------------------------
def _ref_conv(x, w, b, dilation, relu):
    xn = jnp.transpose(x, (0, 2, 1))          # (B, Cin, L)
    wn = jnp.transpose(w, (2, 1, 0))          # (Cout, Cin, K)
    K = w.shape[0]
    pad = (K - 1) * dilation
    y = jax.lax.conv_general_dilated(
        xn, wn, window_strides=(1,), padding=[(pad, 0)], rhs_dilation=(dilation,),
        dimension_numbers=("NCH", "OIH", "NCH"))
    y = y + b[None, :, None]
    if relu:
        y = jnp.maximum(y, 0.0)
    return jnp.transpose(y, (0, 2, 1))


def ref_forward(inputs, lens, params):
    x = params["emb"][inputs] + params["pe"][lens]
    for i, blk in enumerate(params["blocks"]):
        d = 2 ** i
        out = _ref_conv(x, blk["w1"], blk["b1"], d, True)
        out = _ref_conv(out, blk["w2"], blk["b2"], d, True)
        res = _ref_conv(x, blk["wd"], blk["bd"], 1, False) if "wd" in blk else x
        x = jnp.maximum(out + res, 0.0)
    return x


# ----------------------------------------------------------------------------
if __name__ == "__main__":
    # Small shapes: batch=2, seq=16, embedding_dim=32, channel=48, level=3, k=3
    B, L = 2, 16
    EMB_DIM, MAX_LEN, CHANNEL, LEVEL, KSIZE = 32, 16, 48, 3, 3

    key = jax.random.PRNGKey(0)
    kp_key, ki_key = jax.random.split(key)
    params = init_params(kp_key, EMB_DIM, MAX_LEN, CHANNEL, LEVEL, KSIZE)
    kparams = prepare_kernel_params(params)

    inputs = jax.random.randint(ki_key, (B, L), 1, 252, dtype=jnp.int32)  # char ids
    lens = jnp.broadcast_to(jnp.arange(L, dtype=jnp.int32), (B, L))       # position ids

    out = tcn_forward(inputs, lens, kparams, CHANNEL, KSIZE)
    out = jax.block_until_ready(out)
    assert out.shape == (B, L, CHANNEL), out.shape

    ref = jax.block_until_ready(ref_forward(inputs, lens, params))
    np.testing.assert_allclose(np.asarray(out), np.asarray(ref), rtol=1e-4, atol=1e-5)

    print("KERNEL_OK")
</pallas_src>

<mosaic_0001>
module attributes {stable_mosaic.version = 11 : i64} {
  func.func @_fused_temporal_block_kernel(%arg0: i32, %arg1: memref<2x16x128xf32, #tpu.memory_space<vmem>>, %arg2: memref<384x128xf32, #tpu.memory_space<vmem>>, %arg3: memref<1x128xf32, #tpu.memory_space<vmem>>, %arg4: memref<384x128xf32, #tpu.memory_space<vmem>>, %arg5: memref<1x128xf32, #tpu.memory_space<vmem>>, %arg6: memref<128x128xf32, #tpu.memory_space<vmem>>, %arg7: memref<1x128xf32, #tpu.memory_space<vmem>>, %arg8: memref<2x16x128xf32, #tpu.memory_space<vmem>>, %arg9: memref<2x24x128xf32, #tpu.memory_space<vmem>>, %arg10: memref<2x24x128xf32, #tpu.memory_space<vmem>>) attributes {dimension_semantics = [#tpu.dimension_semantics<arbitrary>], iteration_bounds = array<i64: 1>, scalar_prefetch = 0 : i64, scratch_operands = 2 : i64, tpu.core_type = #tpu.core_type<tc>, window_params = [{pipeline_mode = #tpu.pipeline_mode<synchronous>, transform_indices = @transform_0, window_bounds = array<i64: 2, 16, 128>}, {pipeline_mode = #tpu.pipeline_mode<synchronous>, transform_indices = @transform_1, window_bounds = array<i64: 384, 128>}, {pipeline_mode = #tpu.pipeline_mode<synchronous>, transform_indices = @transform_2, window_bounds = array<i64: 1, 128>}, {pipeline_mode = #tpu.pipeline_mode<synchronous>, transform_indices = @transform_3, window_bounds = array<i64: 384, 128>}, {pipeline_mode = #tpu.pipeline_mode<synchronous>, transform_indices = @transform_4, window_bounds = array<i64: 1, 128>}, {pipeline_mode = #tpu.pipeline_mode<synchronous>, transform_indices = @transform_5, window_bounds = array<i64: 128, 128>}, {pipeline_mode = #tpu.pipeline_mode<synchronous>, transform_indices = @transform_6, window_bounds = array<i64: 1, 128>}, {pipeline_mode = #tpu.pipeline_mode<synchronous>, transform_indices = @transform_7, window_bounds = array<i64: 2, 16, 128>}]} {
    %c0 = arith.constant 0 : index
    %c0_0 = arith.constant 0 : index
    %c0_1 = arith.constant 0 : index
    %0 = vector.load %arg1[%c0, %c0_0, %c0_1] : memref<2x16x128xf32, #tpu.memory_space<vmem>>, vector<2x16x128xf32>
    %cst = arith.constant 0.000000e+00 : f32
    %1 = vector.broadcast %cst : f32 to vector<2x8x128xf32>
    %c0_2 = arith.constant 0 : index
    %c0_3 = arith.constant 0 : index
    %c0_4 = arith.constant 0 : index
    %2 = vector.load %arg9[%c0_2, %c0_3, %c0_4] : memref<2x24x128xf32, #tpu.memory_space<vmem>>, vector<2x8x128xf32>
    tpu.vector_store %arg9[%c0_2, %c0_3, %c0_4], %1 {strides = array<i32>} : memref<2x24x128xf32, #tpu.memory_space<vmem>>, vector<2x8x128xf32>,
    %c0_5 = arith.constant 0 : index
    %c8 = arith.constant 8 : index
    %c0_6 = arith.constant 0 : index
    %3 = vector.load %arg9[%c0_5, %c8, %c0_6] : memref<2x24x128xf32, #tpu.memory_space<vmem>>, vector<2x16x128xf32>
    tpu.vector_store %arg9[%c0_5, %c8, %c0_6], %0 {strides = array<i32>} : memref<2x24x128xf32, #tpu.memory_space<vmem>>, vector<2x16x128xf32>,
    %c0_7 = arith.constant 0 : index
    %c6 = arith.constant 6 : index
    %c0_8 = arith.constant 0 : index
    %4 = vector.load %arg9[%c0_7, %c6, %c0_8] : memref<2x24x128xf32, #tpu.memory_space<vmem>>, vector<2x16x128xf32>
    %c0_9 = arith.constant 0 : index
    %c7 = arith.constant 7 : index
    %c0_10 = arith.constant 0 : index
    %5 = vector.load %arg9[%c0_9, %c7, %c0_10] : memref<2x24x128xf32, #tpu.memory_space<vmem>>, vector<2x16x128xf32>
    %c0_11 = arith.constant 0 : index
    %c8_12 = arith.constant 8 : index
    %c0_13 = arith.constant 0 : index
    %6 = vector.load %arg9[%c0_11, %c8_12, %c0_13] : memref<2x24x128xf32, #tpu.memory_space<vmem>>, vector<2x16x128xf32>
    %7 = tpu.concatenate %4, %5, %6 in 2 : vector<2x16x128xf32>, vector<2x16x128xf32>, vector<2x16x128xf32> -> vector<2x16x384xf32>
    %8 = vector.shape_cast %7 : vector<2x16x384xf32> to vector<32x384xf32>
    %c0_14 = arith.constant 0 : index
    %c0_15 = arith.constant 0 : index
    %9 = vector.load %arg2[%c0_14, %c0_15] : memref<384x128xf32, #tpu.memory_space<vmem>>, vector<384x128xf32>
    %cst_16 = arith.constant dense<0.000000e+00> : vector<32x128xf32>
    %10 = tpu.matmul %8, %9, %cst_16 {dimension_numbers = #tpu.dot_dimension_numbers<[1], [0], [0], [1], [0, 0, 1, 1], [], []>} : vector<32x384xf32>, vector<384x128xf32>, vector<32x128xf32> -> vector<32x128xf32>
    %c0_17 = arith.constant 0 : index
    %c0_18 = arith.constant 0 : index
    %11 = vector.load %arg3[%c0_17, %c0_18] : memref<1x128xf32, #tpu.memory_space<vmem>>, vector<1x128xf32>
    %12 = vector.broadcast %11 : vector<1x128xf32> to vector<32x128xf32>
    %13 = arith.addf %10, %12 : vector<32x128xf32>
    %cst_19 = arith.constant 0.000000e+00 : f32
    %14 = vector.broadcast %cst_19 : f32 to vector<32x128xf32>
    %15 = arith.maximumf %13, %14 : vector<32x128xf32>
    %cst_20 = arith.constant 0.000000e+00 : f32
    %16 = vector.broadcast %cst_20 : f32 to vector<2x8x128xf32>
    %c0_21 = arith.constant 0 : index
    %c0_22 = arith.constant 0 : index
    %c0_23 = arith.constant 0 : index
    %17 = vector.load %arg10[%c0_21, %c0_22, %c0_23] : memref<2x24x128xf32, #tpu.memory_space<vmem>>, vector<2x8x128xf32>
    tpu.vector_store %arg10[%c0_21, %c0_22, %c0_23], %16 {strides = array<i32>} : memref<2x24x128xf32, #tpu.memory_space<vmem>>, vector<2x8x128xf32>,
    %18 = vector.shape_cast %15 : vector<32x128xf32> to vector<2x16x128xf32>
    %c0_24 = arith.constant 0 : index
    %c8_25 = arith.constant 8 : index
    %c0_26 = arith.constant 0 : index
    %19 = vector.load %arg10[%c0_24, %c8_25, %c0_26] : memref<2x24x128xf32, #tpu.memory_space<vmem>>, vector<2x16x128xf32>
    tpu.vector_store %arg10[%c0_24, %c8_25, %c0_26], %18 {strides = array<i32>} : memref<2x24x128xf32, #tpu.memory_space<vmem>>, vector<2x16x128xf32>,
    %c0_27 = arith.constant 0 : index
    %c6_28 = arith.constant 6 : index
    %c0_29 = arith.constant 0 : index
    %20 = vector.load %arg10[%c0_27, %c6_28, %c0_29] : memref<2x24x128xf32, #tpu.memory_space<vmem>>, vector<2x16x128xf32>
    %c0_30 = arith.constant 0 : index
    %c7_31 = arith.constant 7 : index
    %c0_32 = arith.constant 0 : index
    %21 = vector.load %arg10[%c0_30, %c7_31, %c0_32] : memref<2x24x128xf32, #tpu.memory_space<vmem>>, vector<2x16x128xf32>
    %c0_33 = arith.constant 0 : index
    %c8_34 = arith.constant 8 : index
    %c0_35 = arith.constant 0 : index
    %22 = vector.load %arg10[%c0_33, %c8_34, %c0_35] : memref<2x24x128xf32, #tpu.memory_space<vmem>>, vector<2x16x128xf32>
    %23 = tpu.concatenate %20, %21, %22 in 2 : vector<2x16x128xf32>, vector<2x16x128xf32>, vector<2x16x128xf32> -> vector<2x16x384xf32>
    %24 = vector.shape_cast %23 : vector<2x16x384xf32> to vector<32x384xf32>
    %c0_36 = arith.constant 0 : index
    %c0_37 = arith.constant 0 : index
    %25 = vector.load %arg4[%c0_36, %c0_37] : memref<384x128xf32, #tpu.memory_space<vmem>>, vector<384x128xf32>
    %cst_38 = arith.constant dense<0.000000e+00> : vector<32x128xf32>
    %26 = tpu.matmul %24, %25, %cst_38 {dimension_numbers = #tpu.dot_dimension_numbers<[1], [0], [0], [1], [0, 0, 1, 1], [], []>} : vector<32x384xf32>, vector<384x128xf32>, vector<32x128xf32> -> vector<32x128xf32>
    %c0_39 = arith.constant 0 : index
    %c0_40 = arith.constant 0 : index
    %27 = vector.load %arg5[%c0_39, %c0_40] : memref<1x128xf32, #tpu.memory_space<vmem>>, vector<1x128xf32>
    %28 = vector.broadcast %27 : vector<1x128xf32> to vector<32x128xf32>
    %29 = arith.addf %26, %28 : vector<32x128xf32>
    %cst_41 = arith.constant 0.000000e+00 : f32
    %30 = vector.broadcast %cst_41 : f32 to vector<32x128xf32>
    %31 = arith.maximumf %29, %30 : vector<32x128xf32>
    %32 = vector.shape_cast %0 : vector<2x16x128xf32> to vector<32x128xf32>
    %c0_42 = arith.constant 0 : index
    %c0_43 = arith.constant 0 : index
    %33 = vector.load %arg6[%c0_42, %c0_43] : memref<128x128xf32, #tpu.memory_space<vmem>>, vector<128x128xf32>
    %cst_44 = arith.constant dense<0.000000e+00> : vector<32x128xf32>
    %34 = tpu.matmul %32, %33, %cst_44 {dimension_numbers = #tpu.dot_dimension_numbers<[1], [0], [0], [1], [0, 0, 1, 1], [], []>} : vector<32x128xf32>, vector<128x128xf32>, vector<32x128xf32> -> vector<32x128xf32>
    %c0_45 = arith.constant 0 : index
    %c0_46 = arith.constant 0 : index
    %35 = vector.load %arg7[%c0_45, %c0_46] : memref<1x128xf32, #tpu.memory_space<vmem>>, vector<1x128xf32>
    %36 = vector.broadcast %35 : vector<1x128xf32> to vector<32x128xf32>
    %37 = arith.addf %34, %36 : vector<32x128xf32>
    %38 = arith.addf %31, %37 : vector<32x128xf32>
    %cst_47 = arith.constant 0.000000e+00 : f32
    %39 = vector.broadcast %cst_47 : f32 to vector<32x128xf32>
    %40 = arith.maximumf %38, %39 : vector<32x128xf32>
    %41 = vector.shape_cast %40 : vector<32x128xf32> to vector<2x16x128xf32>
    %c0_48 = arith.constant 0 : index
    %c0_49 = arith.constant 0 : index
    %c0_50 = arith.constant 0 : index
    %42 = vector.load %arg8[%c0_48, %c0_49, %c0_50] : memref<2x16x128xf32, #tpu.memory_space<vmem>>, vector<2x16x128xf32>
    tpu.vector_store %arg8[%c0_48, %c0_49, %c0_50], %41 {strides = array<i32>} : memref<2x16x128xf32, #tpu.memory_space<vmem>>, vector<2x16x128xf32>,
    return
  }
  func.func @transform_0(%arg0: i32) -> (i32, i32, i32) {
    %c0_i32 = arith.constant 0 : i32
    %c0_i32_0 = arith.constant 0 : i32
    %c0_i32_1 = arith.constant 0 : i32
    %c0_i32_2 = arith.constant 0 : i32
    return %c0_i32, %c0_i32_0, %c0_i32_1 : i32, i32, i32
  }
  func.func @transform_1(%arg0: i32) -> (i32, i32) {
    %c0_i32 = arith.constant 0 : i32
    %c0_i32_0 = arith.constant 0 : i32
    %c0_i32_1 = arith.constant 0 : i32
    return %c0_i32, %c0_i32_0 : i32, i32
  }
  func.func @transform_2(%arg0: i32) -> (i32, i32) {
    %c0_i32 = arith.constant 0 : i32
    %c0_i32_0 = arith.constant 0 : i32
    %c0_i32_1 = arith.constant 0 : i32
    return %c0_i32, %c0_i32_0 : i32, i32
  }
  func.func @transform_3(%arg0: i32) -> (i32, i32) {
    %c0_i32 = arith.constant 0 : i32
    %c0_i32_0 = arith.constant 0 : i32
    %c0_i32_1 = arith.constant 0 : i32
    return %c0_i32, %c0_i32_0 : i32, i32
  }
  func.func @transform_4(%arg0: i32) -> (i32, i32) {
    %c0_i32 = arith.constant 0 : i32
    %c0_i32_0 = arith.constant 0 : i32
    %c0_i32_1 = arith.constant 0 : i32
    return %c0_i32, %c0_i32_0 : i32, i32
  }
  func.func @transform_5(%arg0: i32) -> (i32, i32) {
    %c0_i32 = arith.constant 0 : i32
    %c0_i32_0 = arith.constant 0 : i32
    %c0_i32_1 = arith.constant 0 : i32
    return %c0_i32, %c0_i32_0 : i32, i32
  }
  func.func @transform_6(%arg0: i32) -> (i32, i32) {
    %c0_i32 = arith.constant 0 : i32
    %c0_i32_0 = arith.constant 0 : i32
    %c0_i32_1 = arith.constant 0 : i32
    return %c0_i32, %c0_i32_0 : i32, i32
  }
  func.func @transform_7(%arg0: i32) -> (i32, i32, i32) {
    %c0_i32 = arith.constant 0 : i32
    %c0_i32_0 = arith.constant 0 : i32
    %c0_i32_1 = arith.constant 0 : i32
    %c0_i32_2 = arith.constant 0 : i32
    return %c0_i32, %c0_i32_0, %c0_i32_1 : i32, i32, i32
  }
}

</mosaic_0001>

<bundles_post_ra>
// kernel: tpu_custom_call.1
= control target key start
LH: loop header
LB: loop body
LE: loop exit
PB: predicated region body
PF: predicated region fallthrough
CT: control target
= control target key end

     0   :  { %12 = vsyncpa [#allocation5], 0  ;;  %s804_s0 = inlined_call_operand.hbm [shape: f32[2,16,128], index: 0, kind: input, shape index: {}]   ;;  %s805_s1 = inlined_call_operand.hbm [shape: f32[384,128], index: 1, kind: input, shape index: {}]   ;;  %s806_s2 = inlined_call_operand.vmem [shape: f32[1,128], index: 2, kind: input, shape index: {}]   ;;  %s807_s3 = inlined_call_operand.hbm [shape: f32[384,128], index: 3, kind: input, shape index: {}]   ;;  %s808_s4 = inlined_call_operand.vmem [shape: f32[1,128], index: 4, kind: input, shape index: {}]   ;;  %s809_s5 = inlined_call_operand.hbm [shape: f32[128,128], index: 5, kind: input, shape index: {}]   ;;  %s810_s6 = inlined_call_operand.vmem [shape: f32[1,128], index: 6, kind: input, shape index: {}]   ;;  %s811_s7 = inlined_call_operand.hbm [shape: f32[2,16,128], index: 7, kind: output, shape index: {}]  }
   0x1   :  { %13 = vsyncpa [#allocation8], 0 }
   0x2   :  { %14 = vsyncpa [#allocation11], 0 }
   0x3   :  { %15 = vsyncpa [#allocation6], 0  ;;  %s33_s26 = sshll.u32 %s805_s1, 4  ;;  %s653_s27 = smov [#allocation7]   ;;  %s34_s26 = int_to_ptr.hbm [resolvable:$true] %s33_s26 }
   0x4   :  { %s35_s28 = sshll.u32 %s653_s27, 4  ;;  %s20_s8 = sshll.u32 %s804_s0, 4  ;;  %s36_s28 = int_to_ptr.vmem [resolvable:$true] %s35_s28  ;;  %s21_s8 = int_to_ptr.hbm [resolvable:$true] %s20_s8 }
   0x5   :  { %s654_s9 = smov 128   ;;  %s655_s10 = smov 8  }
   0x6   :  { %41 = dma.hbm_to_vmem [thread:$0]  %s34_s26, 6144, %s36_s28, [#allocation8], %s654_s9, %s654_s9, %s655_s10  }
   0x7   :  { %s656_s11 = smov [#allocation4]   ;;  %s48_s1 = sshll.u32 %s807_s3, 4  ;;  %s49_s1 = int_to_ptr.hbm [resolvable:$true] %s48_s1 }
   0x8   :  { %s22_s12 = sshll.u32 %s656_s11, 4  ;;  %s63_s16 = sshll.u32 %s809_s5, 4  ;;  %s23_s12 = int_to_ptr.vmem [resolvable:$true] %s22_s12  ;;  %s64_s16 = int_to_ptr.hbm [resolvable:$true] %s63_s16 }
   0x9   :  { %28 = dma.hbm_to_vmem [thread:$0]  %s21_s8, 512, %s23_s12, [#allocation5], %s654_s9, %s654_s9, %s655_s10  }
   0xa   :  { %s657_s17 = smov [#allocation9]   ;;  %s658_s19 = smov [#allocation10]  }
   0xb   :  { %s50_s18 = sshll.u32 %s657_s17, 4  ;;  %s65_s3 = sshll.u32 %s658_s19, 4  ;;  %s51_s18 = int_to_ptr.vmem [resolvable:$true] %s50_s18  ;;  %s66_s3 = int_to_ptr.vmem [resolvable:$true] %s65_s3 }
   0xc   :  { %56 = dma.hbm_to_vmem [thread:$0]  %s49_s1, 6144, %s51_s18, [#allocation8], %s654_s9, %s654_s9, %s655_s10  }
   0xd   :  { %71 = dma.hbm_to_vmem [thread:$0]  %s64_s16, 2048, %s66_s3, [#allocation11], %s654_s9, %s654_s9, %s655_s10  }
   0xe   :  { %645 = dma.done.wait [#allocation5], 512  }
   0xf   :  { %646 = vsyncadd [#allocation5], 4294966784 }
  0x10   :  { %647 = dma.done.wait [#allocation8], 12288  }
  0x11   :  { %648 = vsyncadd [#allocation8], 4294955008 }
  0x12   :  { %649 = dma.done.wait [#allocation11], 2048  }
  0x13   :  { %650 = vsyncadd [#allocation11], 4294965248  ;;  %v659_v0 = vmov 0.0   ;;  %v159_v1 = vld [vmem:[#allocation7 + $0x178] sm:$0xff]  ;;  %v158_v3 = vld [vmem:[#allocation7 + $0x170] sm:$0xff]  ;;  %s483_s26 = sshll.u32 %s811_s7, 4  ;;  %s484_s26 = int_to_ptr.hbm [resolvable:$true] %s483_s26 }
  0x14   :  { %94 = vst [vmem:[#allocation2] sm:$0xff] %v659_v0  ;;  %v127_v2 = vld [vmem:[#allocation7 + $0x78] sm:$0xff]  ;;  %222 = vmatpush.msra.mxu2 %v159_v1  ;;  %v126_v4 = vld [vmem:[#allocation7 + $0x70] sm:$0xff]  ;;  %v157_v6 = vld [vmem:[#allocation7 + $0x168] sm:$0xff] }
  0x15   :  { %95 = vst [vmem:[#allocation2 + $0x18] sm:$0xff] %v659_v0  ;;  %164 = vmatpush.msra.mxu0 %v127_v2  ;;  %v143_v5 = vld [vmem:[#allocation7 + $0xf8] sm:$0xff]  ;;  %v125_v7 = vld [vmem:[#allocation7 + $0x68] sm:$0xff]  ;;  %v142_v8 = vld [vmem:[#allocation7 + $0xf0] sm:$0xff] }
  0x16   :  { %255 = vst [vmem:[#allocation3] sm:$0xff] %v659_v0  ;;  %193 = vmatpush.msra.mxu1 %v143_v5  ;;  %223 = vmatpush.msra.mxu2 %v158_v3  ;;  %v141_v9 = vld [vmem:[#allocation7 + $0xe8] sm:$0xff]  ;;  %v156_v10 = vld [vmem:[#allocation7 + $0x160] sm:$0xff]  ;;  %v155_v13 = vld [vmem:[#allocation7 + $0x158] sm:$0xff] }
  0x17   :  { %256 = vst [vmem:[#allocation3 + $0x18] sm:$0xff] %v659_v0  ;;  %165 = vmatpush.msra.mxu0 %v126_v4  ;;  %v124_v11 = vld [vmem:[#allocation7 + $0x60] sm:$0xff]  ;;  %v123_v14 = vld [vmem:[#allocation7 + $0x58] sm:$0xff]  ;;  %v154_v16 = vld [vmem:[#allocation7 + $0x150] sm:$0xff] }
  0x18   :  { %194 = vmatpush.msra.mxu1 %v142_v8  ;;  %224 = vmatpush.msra.mxu2 %v157_v6  ;;  %v140_v12 = vld [vmem:[#allocation7 + $0xe0] sm:$0xff]  ;;  %v139_v15 = vld [vmem:[#allocation7 + $0xd8] sm:$0xff]  ;;  %v122_v17 = vld [vmem:[#allocation7 + $0x50] sm:$0xff] }
  0x19   :  { %166 = vmatpush.msra.mxu0 %v125_v7  ;;  %v138_v18 = vld [vmem:[#allocation7 + $0xd0] sm:$0xff]  ;;  %v153_v19 = vld [vmem:[#allocation7 + $0x148] sm:$0xff]  ;;  %v152_v22 = vld [vmem:[#allocation7 + $0x140] sm:$0xff] }
  0x1a   :  { %195 = vmatpush.msra.mxu1 %v141_v9  ;;  %225 = vmatpush.msra.mxu2 %v156_v10  ;;  %v121_v20 = vld [vmem:[#allocation7 + $0x48] sm:$0xff]  ;;  %v120_v23 = vld [vmem:[#allocation7 + $0x40] sm:$0xff]  ;;  %v151_v25 = vld [vmem:[#allocation7 + $0x138] sm:$0xff] }
  0x1b   :  { %167 = vmatpush.msra.mxu0 %v124_v11  ;;  %v137_v21 = vld [vmem:[#allocation7 + $0xc8] sm:$0xff]  ;;  %v136_v24 = vld [vmem:[#allocation7 + $0xc0] sm:$0xff]  ;;  %v119_v26 = vld [vmem:[#allocation7 + $0x38] sm:$0xff] }
  0x1c   :  { %196 = vmatpush.msra.mxu1 %v140_v12  ;;  %226 = vmatpush.msra.mxu2 %v155_v13  ;;  %v150_v27 = vld [vmem:[#allocation7 + $0x130] sm:$0xff]  ;;  %v135_v29 = vld [vmem:[#allocation7 + $0xb8] sm:$0xff]  ;;  %v725_v30 = vld [vmem:[#allocation4] sm:$0xff] }
  0x1d   :  { %168 = vmatpush.msra.mxu0 %v123_v14  ;;  %v118_v28 = vld [vmem:[#allocation7 + $0x30] sm:$0xff]  ;;  %96 = vst [vmem:[#allocation2 + $0x8] sm:$0xff] %v725_v30  ;;  %v728_v32 = vld [vmem:[#allocation4 + $0x8] sm:$0xff]  ;;  %v733_v34 = vld [vmem:[#allocation4 + $0x18] sm:$0xff] }
  0x1e   :  { %197 = vmatpush.msra.mxu1 %v139_v15  ;;  %227 = vmatpush.msra.mxu2 %v154_v16  ;;  %v134_v31 = vld [vmem:[#allocation7 + $0xb0] sm:$0xff]  ;;  %97 = vst [vmem:[#allocation2 + $0x10] sm:$0xff] %v728_v32  ;;  %v149_v35 = vld [vmem:[#allocation7 + $0x128] sm:$0xff]  ;;  %v148_v38 = vld [vmem:[#allocation7 + $0x120] sm:$0xff] }
  0x1f   :  { %169 = vmatpush.msra.mxu0 %v122_v17  ;;  %v730_v33 = vld [vmem:[#allocation4 + $0x10] sm:$0xff]  ;;  %v117_v36 = vld [vmem:[#allocation7 + $0x28] sm:$0xff]  ;;  %99 = vst [vmem:[#allocation2 + $0x28] sm:$0xff] %v733_v34  ;;  %v116_v39 = vld [vmem:[#allocation7 + $0x20] sm:$0xff] }
  0x20   :  { %198 = vmatpush.msra.mxu1 %v138_v18  ;;  %228 = vmatpush.msra.mxu2 %v153_v19  ;;  %98 = vst [vmem:[#allocation2 + $0x20] sm:$0xff] %v730_v33  ;;  %v133_v37 = vld [vmem:[#allocation7 + $0xa8] sm:$0xff]  ;;  %v132_v40 = vld [vmem:[#allocation7 + $0xa0] sm:$0xff]  ;;  %v147_v41 = vld [vmem:[#allocation7 + $0x118] sm:$0xff] }
  0x21   :  { %170 = vmatpush.msra.mxu0 %v121_v20  ;;  %v115_v42 = vld [vmem:[#allocation7 + $0x18] sm:$0xff]  ;;  %v146_v44 = vld [vmem:[#allocation7 + $0x110] sm:$0xff]  ;;  %v145_v47 = vld [vmem:[#allocation7 + $0x108] sm:$0xff] }
  0x22   :  { %199 = vmatpush.msra.mxu1 %v137_v21  ;;  %229 = vmatpush.msra.mxu2 %v152_v22  ;;  %v131_v43 = vld [vmem:[#allocation7 + $0x98] sm:$0xff]  ;;  %v114_v45 = vld [vmem:[#allocation7 + $0x10] sm:$0xff]  ;;  %v113_v48 = vld [vmem:[#allocation7 + $0x8] sm:$0xff] }
  0x23   :  { %171 = vmatpush.msra.mxu0 %v120_v23  ;;  %v130_v46 = vld [vmem:[#allocation7 + $0x90] sm:$0xff]  ;;  %v288_v49 = vld [vmem:[#allocation9 + $0x78] sm:$0xff]  ;;  %v129_v50 = vld [vmem:[#allocation7 + $0x88] sm:$0xff] }
  0x24   :  { %200 = vmatpush.msra.mxu1 %v136_v24  ;;  %230 = vmatpush.msra.mxu2 %v151_v25  ;;  %v287_v51 = vld [vmem:[#allocation9 + $0x70] sm:$0xff]  ;;  %v144_v52 = vld [vmem:[#allocation7 + $0x100] sm:$0xff]  ;;  %v737_v56 = vld [vmem:[#allocation9 + $0xf8] sm:$0xff] }
  0x25   :  { %172 = vmatpush.msra.mxu0 %v119_v26  ;;  %v112_v53 = vld [vmem:[#allocation7] sm:$0xff]  ;;  %325 = vmatpush.msra.mxu3 %v288_v49  ;;  %v286_v58 = vld [vmem:[#allocation9 + $0x68] sm:$0xff]  ;;  %v320_v59 = vld [vmem:[#allocation9 + $0x178] sm:$0xff] }
  0x26   :  { %201 = vmatpush.msra.mxu1 %v135_v29  ;;  %231 = vmatpush.msra.mxu2 %v150_v27  ;;  %v100_v54 = vld [vmem:[#allocation2 + $0x6] sm:$0xff]  ;;  %v740_v60 = vld [vmem:[#allocation9 + $0xf0] sm:$0xff]  ;;  %v431_v62 = vld [vmem:[#allocation10 + $0x78] sm:$0xff] }
  0x27   :  { %173 = vmatpush.msra.mxu0 %v118_v28  ;;  %v128_v55 = vld [vmem:[#allocation7 + $0x80] sm:$0xff]  ;;  %326 = vmatpush.msra.mxu3 %v287_v51  ;;  %v319_v63 = vld [vmem:[#allocation9 + $0x170] sm:$0xff]  ;;  %v743_v0 = vld [vmem:[#allocation9 + $0xe8] sm:$0xff] }
  0x28   :  { %202 = vmatpush.msra.mxu1 %v134_v31  ;;  %232 = vmatpush.msra.mxu2 %v149_v35  ;;  %v104_v57 = vld [vmem:[#allocation2 + $0x7] sm:$0xff]  ;;  %v284_v1 = vld [vmem:[#allocation9 + $0x58] sm:$0xff]  ;;  %v430_v2 = vld [vmem:[#allocation10 + $0x70] sm:$0xff] }
  0x29   :  { %174 = vmatpush.msra.mxu0 %v117_v36  ;;  %v285_v61 = vld [vmem:[#allocation9 + $0x60] sm:$0xff]  ;;  %327 = vmatpush.msra.mxu3 %v286_v58  ;;  %v318_v3 = vld [vmem:[#allocation9 + $0x168] sm:$0xff]  ;;  %v749_v7 = vld [vmem:[#allocation9 + $0xd8] sm:$0xff] }
  0x2a   :  { %203 = vmatpush.msra.mxu1 %v133_v37  ;;  %233 = vmatpush.msra.mxu2 %v148_v38  ;;  %v746_v4 = vld [vmem:[#allocation9 + $0xe0] sm:$0xff]  ;;  %v101_v5 = vld [vmem:[#allocation2 + $0xe] sm:$0xff]  ;;  %v316_v10 = vld [vmem:[#allocation9 + $0x158] sm:$0xff] }
  0x2b   :  { %175 = vmatpush.msra.mxu0 %v116_v39  ;;  %328 = vmatpush.msra.mxu3 %v285_v61  ;;  %v317_v6 = vld [vmem:[#allocation9 + $0x160] sm:$0xff]  ;;  %v105_v8 = vld [vmem:[#allocation2 + $0xf] sm:$0xff]  ;;  %v312_v23 = vld [vmem:[#allocation9 + $0x138] sm:$0xff] }
  0x2c   :  { %204 = vmatpush.msra.mxu1 %v132_v40  ;;  %234 = vmatpush.msra.mxu2 %v147_v41  ;;  %v283_v9 = vld [vmem:[#allocation9 + $0x50] sm:$0xff]  ;;  %v429_v12 = vld [vmem:[#allocation10 + $0x68] sm:$0xff]  ;;  %v428_v16 = vld [vmem:[#allocation10 + $0x60] sm:$0xff] }
  0x2d   :  { %176 = vmatpush.msra.mxu0 %v115_v42  ;;  %329 = vmatpush.msra.mxu3 %v284_v1  ;;  %v753_v11 = vld [vmem:[#allocation9 + $0xd0] sm:$0xff]  ;;  %v282_v13 = vld [vmem:[#allocation9 + $0x48] sm:$0xff]  ;;  %v102_v18 = vld [vmem:[#allocation2 + $0x1e] sm:$0xff] }
  0x2e   :  { %205 = vmatpush.msra.mxu1 %v131_v43  ;;  %235 = vmatpush.msra.mxu2 %v146_v44  ;;  %v315_v14 = vld [vmem:[#allocation9 + $0x150] sm:$0xff]  ;;  %v756_v15 = vld [vmem:[#allocation9 + $0xc8] sm:$0xff]  ;;  %v106_v19 = vld [vmem:[#allocation2 + $0x1f] sm:$0xff] }
  0x2f   :  { %177 = vmatpush.msra.mxu0 %v114_v45  ;;  %330 = vmatpush.msra.mxu3 %v283_v9  ;;  %v314_v17 = vld [vmem:[#allocation9 + $0x148] sm:$0xff]  ;;  %v313_v22 = vld [vmem:[#allocation9 + $0x140] sm:$0xff]  ;;  %v311_v24 = vld [vmem:[#allocation9 + $0x130] sm:$0xff] }
  0x30   :  { %206 = vmatpush.msra.mxu1 %v130_v46  ;;  %236 = vmatpush.msra.mxu2 %v145_v47  ;;  %v103_v20 = vld [vmem:[#allocation2 + $0x26] sm:$0xff]  ;;  %v427_v28 = vld [vmem:[#allocation10 + $0x58] sm:$0xff]  ;;  %v426_v36 = vld [vmem:[#allocation10 + $0x50] sm:$0xff] }
  0x31   :  { %178 = vmatpush.msra.mxu0 %v113_v48  ;;  %331 = vmatpush.msra.mxu3 %v282_v13  ;;  %v107_v21 = vld [vmem:[#allocation2 + $0x27] sm:$0xff]  ;;  %v280_v31 = vld [vmem:[#allocation9 + $0x38] sm:$0xff]  ;;  %v279_v38 = vld [vmem:[#allocation9 + $0x30] sm:$0xff] }
  0x32   :  { %207 = vmatpush.msra.mxu1 %v129_v50  ;;  %237 = vmatpush.msra.mxu2 %v144_v52  ;;  %v310_v25 = vld [vmem:[#allocation9 + $0x128] sm:$0xff]  ;;  %v281_v26 = vld [vmem:[#allocation9 + $0x40] sm:$0xff]  ;;  %v765_v35 = vld [vmem:[#allocation9 + $0xb8] sm:$0xff] }
  0x33   :  { %179 = vmatpush.msra.mxu0 %v112_v53  ;;  %238 = vmatmul.f32.vlgmr.msra.gmra.mxu2 %v725_v30  ;;  %v762_v27 = vld [vmem:[#allocation9 + $0xc0] sm:$0xff]  ;;  %v308_v37 = vld [vmem:[#allocation9 + $0x118] sm:$0xff]  ;;  %v768_v39 = vld [vmem:[#allocation9 + $0xb0] sm:$0xff] }
  0x34   :  { %180 = vmatmul.f32.vlgmr.msra.gmra.mxu0 %v100_v54  ;;  %208 = vmatpush.msra.mxu1 %v128_v55  ;;  %v309_v29 = vld [vmem:[#allocation9 + $0x120] sm:$0xff]  ;;  %v425_v40 = vld [vmem:[#allocation10 + $0x48] sm:$0xff]  ;;  %v307_v41 = vld [vmem:[#allocation9 + $0x110] sm:$0xff] }
  0x35   :  { %354 = vmatpush.msrb.mxu0 %v737_v56  ;;  %209 = vmatmul.f32.vlgmr.msra.gmra.mxu1 %v104_v57  ;;  %v278_v42 = vld [vmem:[#allocation9 + $0x28] sm:$0xff]  ;;  %v424_v44 = vld [vmem:[#allocation10 + $0x40] sm:$0xff]  ;;  %v423_v48 = vld [vmem:[#allocation10 + $0x38] sm:$0xff] }
  0x36   :  { %383 = vmatpush.msrb.mxu1 %v320_v59  ;;  %436 = vmatpush.msrb.mxu2 %v431_v62  ;;  %v771_v43 = vld [vmem:[#allocation9 + $0xa8] sm:$0xff]  ;;  %v277_v46 = vld [vmem:[#allocation9 + $0x20] sm:$0xff]  ;;  %v276_v50 = vld [vmem:[#allocation9 + $0x18] sm:$0xff] }
  0x37   :  { %355 = vmatpush.msrb.mxu0 %v740_v60  ;;  %332 = vmatpush.msra.mxu3 %v281_v26  ;;  %v306_v45 = vld [vmem:[#allocation9 + $0x108] sm:$0xff]  ;;  %v293_v47 = vld [vmem:[#allocation9 + $0xa0] sm:$0xff]  ;;  %v292_v51 = vld [vmem:[#allocation9 + $0x98] sm:$0xff] }
  0x38   :  { %384 = vmatpush.msrb.mxu1 %v319_v63  ;;  %437 = vmatpush.msrb.mxu2 %v430_v2  ;;  %v305_v49 = vld [vmem:[#allocation9 + $0x100] sm:$0xff]  ;;  %v422_v52 = vld [vmem:[#allocation10 + $0x30] sm:$0xff]  ;;  %v421_v55 = vld [vmem:[#allocation10 + $0x28] sm:$0xff] }
  0x39   :  { %356 = vmatpush.msrb.mxu0 %v743_v0  ;;  %333 = vmatpush.msra.mxu3 %v280_v31  ;;  %v275_v53 = vld [vmem:[#allocation9 + $0x10] sm:$0xff]  ;;  %v274_v57 = vld [vmem:[#allocation9 + $0x8] sm:$0xff]  ;;  %v420_v59 = vld [vmem:[#allocation10 + $0x20] sm:$0xff] }
  0x3a   :  { %385 = vmatpush.msrb.mxu1 %v318_v3  ;;  %438 = vmatpush.msrb.mxu2 %v429_v12  ;;  %v291_v54 = vld [vmem:[#allocation9 + $0x90] sm:$0xff]  ;;  %v290_v58 = vld [vmem:[#allocation9 + $0x88] sm:$0xff]  ;;  %v273_v61 = vld [vmem:[#allocation9] sm:$0xff] }
  0x3b   :  { %357 = vmatpush.msrb.mxu0 %v746_v4  ;;  %241 = vmatmul.f32.gmra.mxu2 %v728_v32  ;;  %v289_v62 = vld [vmem:[#allocation9 + $0x80] sm:$0xff]  ;;  %v419_v63 = vld [vmem:[#allocation10 + $0x18] sm:$0xff]  ;;  %v418_v1 = vld [vmem:[#allocation10 + $0x10] sm:$0xff] }
  0x3c   :  { %183 = vmatmul.f32.gmra.mxu0 %v101_v5  ;;  %386 = vmatpush.msrb.mxu1 %v317_v6  ;;  %v417_v2 = vld [vmem:[#allocation10 + $0x8] sm:$0xff]  ;;  %v416_v3 = vld [vmem:[#allocation10] sm:$0xff] }
  0x3d   :  { %358 = vmatpush.msrb.mxu0 %v749_v7  ;;  %212 = vmatmul.f32.gmra.mxu1 %v105_v8 }
  0x3e   :  { %387 = vmatpush.msrb.mxu1 %v316_v10  ;;  %439 = vmatpush.msrb.mxu2 %v428_v16 }
  0x3f   :  { %359 = vmatpush.msrb.mxu0 %v753_v11  ;;  %334 = vmatpush.msra.mxu3 %v279_v38  ;;  %v523_v38 = vld [vmem:[%s808_s4] ss:$0 sm:$0xff]  ;;  %s660_s4 = smov [#allocation12]  }
  0x40   :  { %388 = vmatpush.msrb.mxu1 %v315_v14  ;;  %440 = vmatpush.msrb.mxu2 %v427_v28 }
  0x41   :  { %360 = vmatpush.msrb.mxu0 %v756_v15  ;;  %335 = vmatpush.msra.mxu3 %v278_v42 }
  0x42   :  { %389 = vmatpush.msrb.mxu1 %v314_v17  ;;  %441 = vmatpush.msrb.mxu2 %v426_v36 }
  0x43   :  { %244 = vmatmul.f32.gmra.mxu2 %v730_v33  ;;  %361 = vmatpush.msrb.mxu0 %v762_v27 }
  0x44   :  { %186 = vmatmul.f32.gmra.mxu0 %v102_v18  ;;  %390 = vmatpush.msrb.mxu1 %v313_v22 }
  0x45   :  { %215 = vmatmul.f32.gmra.mxu1 %v106_v19  ;;  %362 = vmatpush.msrb.mxu0 %v765_v35 }
  0x46   :  { %391 = vmatpush.msrb.mxu1 %v312_v23  ;;  %442 = vmatpush.msrb.mxu2 %v425_v40 }
  0x47   :  { %363 = vmatpush.msrb.mxu0 %v768_v39  ;;  %336 = vmatpush.msra.mxu3 %v277_v46 }
  0x48   :  { %392 = vmatpush.msrb.mxu1 %v311_v24  ;;  %443 = vmatpush.msrb.mxu2 %v424_v44 }
  0x49   :  { %364 = vmatpush.msrb.mxu0 %v771_v43  ;;  %337 = vmatpush.msra.mxu3 %v276_v50 }
  0x4a   :  { %393 = vmatpush.msrb.mxu1 %v310_v25  ;;  %444 = vmatpush.msrb.mxu2 %v423_v48 }
  0x4b   :  { %247 = vmatmul.f32.gmra.mxu2 %v733_v34  ;;  %365 = vmatpush.msrb.mxu0 %v293_v47 }
  0x4c   :  { %189 = vmatmul.f32.gmra.mxu0 %v103_v20  ;;  %394 = vmatpush.msrb.mxu1 %v309_v29 }
  0x4d   :  { %218 = vmatmul.f32.gmra.mxu1 %v107_v21  ;;  %366 = vmatpush.msrb.mxu0 %v292_v51 }
  0x4e   :  { %395 = vmatpush.msrb.mxu1 %v308_v37  ;;  %445 = vmatpush.msrb.mxu2 %v422_v52 }
  0x4f   :  { %338 = vmatpush.msra.mxu3 %v275_v53  ;;  %367 = vmatpush.msrb.mxu0 %v291_v54 }
  0x50   :  { %396 = vmatpush.msrb.mxu1 %v307_v41  ;;  %446 = vmatpush.msrb.mxu2 %v421_v55  ;;  %v524_v41 = vld [vmem:[%s810_s6] ss:$0 sm:$0xff]  ;;  %s481_s6 = sshll.u32 %s660_s4, 4  ;;  %s482_s6 = int_to_ptr.vmem [resolvable:$true] %s481_s6 }
  0x51   :  { %339 = vmatpush.msra.mxu3 %v274_v57  ;;  %368 = vmatpush.msrb.mxu0 %v290_v58 }
  0x52   :  { %397 = vmatpush.msrb.mxu1 %v306_v45  ;;  %447 = vmatpush.msrb.mxu2 %v420_v59 }
  0x53   :  { %340 = vmatpush.msra.mxu3 %v273_v61  ;;  %369 = vmatpush.msrb.mxu0 %v289_v62 }
  0x54   :  { %398 = vmatpush.msrb.mxu1 %v305_v49  ;;  %448 = vmatpush.msrb.mxu2 %v419_v63 }
  0x55   :  { %498 = vmatpush.msrb.mxu3 %v737_v56  ;;  %v522_v56 = vld [vmem:[%s806_s2] ss:$0 sm:$0xff] }
  0x56   :  { %449 = vmatpush.msrb.mxu2 %v418_v1 }
  0x57   :  { %499 = vmatpush.msrb.mxu3 %v740_v60 }
  0x58   :  { %450 = vmatpush.msrb.mxu2 %v417_v2 }
  0x59   :  { %500 = vmatpush.msrb.mxu3 %v743_v0 }
  0x5a   :  { %451 = vmatpush.msrb.mxu2 %v416_v3 }
  0x5b   :  { %501 = vmatpush.msrb.mxu3 %v746_v4  ;;  %452 = vmatmul.f32.vlgmr.msrb.gmra.mxu2 %v725_v30 }
  0x5d   :  { %502 = vmatpush.msrb.mxu3 %v749_v7 }
  0x5f   :  { %503 = vmatpush.msrb.mxu3 %v753_v11 }
  0x61   :  { %504 = vmatpush.msrb.mxu3 %v756_v15 }
  0x63   :  { %505 = vmatpush.msrb.mxu3 %v762_v27  ;;  %455 = vmatmul.f32.gmra.mxu2 %v728_v32 }
  0x65   :  { %506 = vmatpush.msrb.mxu3 %v765_v35 }
  0x67   :  { %507 = vmatpush.msrb.mxu3 %v768_v39 }
  0x69   :  { %508 = vmatpush.msrb.mxu3 %v771_v43 }
  0x6b   :  { %509 = vmatpush.msrb.mxu3 %v293_v47  ;;  %458 = vmatmul.f32.gmra.mxu2 %v730_v33 }
  0x6d   :  { %510 = vmatpush.msrb.mxu3 %v292_v51 }
  0x6f   :  { %511 = vmatpush.msrb.mxu3 %v291_v54 }
  0x71   :  { %512 = vmatpush.msrb.mxu3 %v290_v58 }
  0x73   :  { %513 = vmatpush.msrb.mxu3 %v289_v62  ;;  %461 = vmatmul.f32.gmra.mxu2 %v733_v34 }
  0xb1   :  { %v181_v60 = vpop.f32.mrf.mxu0 }
  0xb2   :  { %v182_v5 = vadd.f32 %v522_v56, %v181_v60  ;;  %v210_v0 = vpop.f32.mrf.mxu1 }
  0xb4   :  { %v211_v4 = vadd.f32 %v210_v0, %v182_v5 }
  0xb6   :  { %v239_v30 = vpop.f32.mrf.mxu2 }
  0xb7   :  { %v240_v6 = vadd.f32 %v239_v30, %v211_v4 }
  0xb9   :  { %v184_v7 = vpop.f32.mrf.mxu0  ;;  %v251_v8 = vmax.f32 %v240_v6, 0.0 }
  0xba   :  { %v185_v9 = vadd.f32 %v522_v56, %v184_v7  ;;  %v213_v10 = vpop.f32.mrf.mxu1 }
  0xbb   :  { %257 = vst [vmem:[#allocation3 + $0x8] sm:$0xff] %v251_v8  ;;  %399 = vmatmul.f32.vlgmr.msrb.gmra.mxu1 %v251_v8 }
  0xbc   :  { %v214_v11 = vadd.f32 %v213_v10, %v185_v9 }
  0xbe   :  { %v242_v32 = vpop.f32.mrf.mxu2 }
  0xbf   :  { %v243_v12 = vadd.f32 %v242_v32, %v214_v11 }
  0xc1   :  { %v187_v13 = vpop.f32.mrf.mxu0  ;;  %v252_v14 = vmax.f32 %v243_v12, 0.0 }
  0xc2   :  { %v188_v15 = vadd.f32 %v522_v56, %v187_v13  ;;  %v261_v16 = vld [vmem:[#allocation3 + $0x6] sm:$0xff]  ;;  %v216_v18 = vpop.f32.mrf.mxu1 }
  0xc3   :  { %v265_v17 = vld [vmem:[#allocation3 + $0x7] sm:$0xff]  ;;  %258 = vst [vmem:[#allocation3 + $0x10] sm:$0xff] %v252_v14  ;;  %341 = vmatmul.f32.vlgmr.msra.gmra.mxu3 %v261_v16  ;;  %402 = vmatmul.f32.gmra.mxu1 %v252_v14 }
  0xc4   :  { %370 = vmatmul.f32.vlgmr.msrb.gmra.mxu0 %v265_v17  ;;  %v217_v33 = vadd.f32 %v216_v18, %v188_v15 }
  0xc6   :  { %v245_v19 = vpop.f32.mrf.mxu2 }
  0xc7   :  { %v246_v20 = vadd.f32 %v245_v19, %v217_v33 }
  0xc9   :  { %v190_v21 = vpop.f32.mrf.mxu0  ;;  %v253_v22 = vmax.f32 %v246_v20, 0.0 }
  0xca   :  { %v191_v23 = vadd.f32 %v522_v56, %v190_v21  ;;  %v262_v24 = vld [vmem:[#allocation3 + $0xe] sm:$0xff]  ;;  %v219_v25 = vpop.f32.mrf.mxu1 }
  0xcb   :  { %259 = vst [vmem:[#allocation3 + $0x20] sm:$0xff] %v253_v22  ;;  %344 = vmatmul.f32.gmra.mxu3 %v262_v24  ;;  %405 = vmatmul.f32.gmra.mxu1 %v253_v22  ;;  %v266_v35 = vld [vmem:[#allocation3 + $0xf] sm:$0xff] }
  0xcc   :  { %v220_v26 = vadd.f32 %v219_v25, %v191_v23 }
  0xce   :  { %v248_v27 = vpop.f32.mrf.mxu2 }
  0xcf   :  { %v249_v28 = vadd.f32 %v248_v27, %v220_v26 }
  0xd1   :  { %v254_v29 = vmax.f32 %v249_v28, 0.0 }
  0xd2   :  { %v263_v34 = vld [vmem:[#allocation3 + $0x1e] sm:$0xff] }
  0xd3   :  { %260 = vst [vmem:[#allocation3 + $0x28] sm:$0xff] %v254_v29  ;;  %347 = vmatmul.f32.gmra.mxu3 %v263_v34  ;;  %408 = vmatmul.f32.gmra.mxu1 %v254_v29  ;;  %v267_v36 = vld [vmem:[#allocation3 + $0x1f] sm:$0xff] }
  0xda   :  { %v264_v31 = vld [vmem:[#allocation3 + $0x26] sm:$0xff] }
  0xdb   :  { %350 = vmatmul.f32.gmra.mxu3 %v264_v31  ;;  %v268_v37 = vld [vmem:[#allocation3 + $0x27] sm:$0xff] }
  0xde   :  { %v453_v43 = vpop.f32.mrf.mxu2 }
  0xdf   :  { %v454_v47 = vadd.f32 %v524_v41, %v453_v43 }
  0xe3   :  { %373 = vmatmul.f32.vlgmr.msrb.gmra.mxu3 %v266_v35 }
  0xe6   :  { %v456_v54 = vpop.f32.mrf.mxu2 }
  0xe7   :  { %v457_v62 = vadd.f32 %v524_v41, %v456_v54 }
  0xeb   :  { %376 = vmatmul.f32.gmra.mxu3 %v267_v36 }
  0xee   :  { %v459_v1 = vpop.f32.mrf.mxu2 }
  0xef   :  { %v460_v30 = vadd.f32 %v524_v41, %v459_v1 }
  0xf3   :  { %379 = vmatmul.f32.gmra.mxu3 %v268_v37 }
  0xf6   :  { %v462_v10 = vpop.f32.mrf.mxu2 }
  0xf7   :  { %v463_v14 = vadd.f32 %v524_v41, %v462_v10 }
 0x138   :  { %v400_v45 = vpop.f32.mrf.mxu1 }
 0x140   :  { %v403_v55 = vpop.f32.mrf.mxu1 }
 0x141   :  { %v371_v42 = vpop.f32.mrf.mxu0 }
 0x146   :  { %v342_v39 = vpop.f32.mrf.mxu3 }
 0x147   :  { %v343_v40 = vadd.f32 %v523_v38, %v342_v39 }
 0x148   :  { %v406_v56 = vpop.f32.mrf.mxu1 }
 0x149   :  { %v372_v44 = vadd.f32 %v371_v42, %v343_v40 }
 0x14b   :  { %v401_v46 = vadd.f32 %v400_v45, %v372_v44 }
 0x14d   :  { %v412_v48 = vmax.f32 %v401_v46, 0.0 }
 0x14e   :  { %v345_v49 = vpop.f32.mrf.mxu3 }
 0x14f   :  { %v465_v50 = vadd.f32 %v454_v47, %v412_v48  ;;  %v346_v57 = vadd.f32 %v523_v38, %v345_v49 }
 0x150   :  { %v409_v12 = vpop.f32.mrf.mxu1 }
 0x151   :  { %v469_v51 = vmax.f32 %v465_v50, 0.0 }
 0x153   :  { %473 = vst [vmem:[#allocation12] sm:$0xff] %v469_v51 }
 0x156   :  { %v348_v52 = vpop.f32.mrf.mxu3 }
 0x157   :  { %v349_v2 = vadd.f32 %v523_v38, %v348_v52 }
 0x15e   :  { %v351_v53 = vpop.f32.mrf.mxu3 }
 0x15f   :  { %v352_v7 = vadd.f32 %v523_v38, %v351_v53 }
 0x166   :  { %v374_v58 = vpop.f32.mrf.mxu3 }
 0x167   :  { %v375_v59 = vadd.f32 %v374_v58, %v346_v57 }
 0x169   :  { %v404_v61 = vadd.f32 %v403_v55, %v375_v59 }
 0x16b   :  { %v413_v63 = vmax.f32 %v404_v61, 0.0 }
 0x16d   :  { %v466_v3 = vadd.f32 %v457_v62, %v413_v63 }
 0x16e   :  { %v377_v60 = vpop.f32.mrf.mxu3 }
 0x16f   :  { %v470_v5 = vmax.f32 %v466_v3, 0.0  ;;  %v378_v0 = vadd.f32 %v377_v60, %v349_v2 }
 0x171   :  { %474 = vst [vmem:[#allocation12 + $0x8] sm:$0xff] %v470_v5  ;;  %v407_v4 = vadd.f32 %v406_v56, %v378_v0 }
 0x173   :  { %v414_v6 = vmax.f32 %v407_v4, 0.0 }
 0x175   :  { %v467_v8 = vadd.f32 %v460_v30, %v414_v6 }
 0x176   :  { %v380_v9 = vpop.f32.mrf.mxu3 }
 0x177   :  { %v471_v11 = vmax.f32 %v467_v8, 0.0  ;;  %v381_v32 = vadd.f32 %v380_v9, %v352_v7 }
 0x179   :  { %475 = vst [vmem:[#allocation12 + $0x10] sm:$0xff] %v471_v11  ;;  %v410_v13 = vadd.f32 %v409_v12, %v381_v32 }
 0x17b   :  { %v415_v15 = vmax.f32 %v410_v13, 0.0 }
 0x17d   :  { %v468_v16 = vadd.f32 %v463_v14, %v415_v15 }
 0x17f   :  { %v472_v17 = vmax.f32 %v468_v16, 0.0 }
 0x181   :  { %476 = vst [vmem:[#allocation12 + $0x18] sm:$0xff] %v472_v17 }
 0x182   :  { %489 = dma.vmem_to_hbm [thread:$0]  %s482_s6, 512, %s484_s26, [#allocation6], %s654_s9, %s654_s9, %s655_s10  }
 0x183   :  { %651 = dma.done.wait [#allocation6], 512  }
 0x184   :  { %652 = vsyncadd [#allocation6], 4294966784 }
 0x185   :  { %494 = vsyncpa [#allocation5], 1 }
 0x186   :  { %495 = vsyncpa [#allocation8], 1 }
 0x187   :  { %496 = vsyncpa [#allocation11], 1 }
 0x188   :  { %497 = vsyncpa [#allocation6], 1 }

</bundles_post_ra>
